<compile_context>
chip_gen: v7x
topology: tpu7x:2x2x1
jax: 0.10.0
libtpu: 0.0.40
codegen_flags: <defaults>
</compile_context>

<pallas_src>
import math
import functools

import jax
import jax.numpy as jnp
from jax.experimental import pallas as pl
from jax.experimental.pallas import tpu as pltpu

LANE = 128  # TPU vreg lane width


# ---------------------------------------------------------------------------
# Parameter (buffer) construction -- deterministic, mirrors PyTorch __init__.
# ---------------------------------------------------------------------------
def build_pe(d_model: int, max_len: int) -> jnp.ndarray:
    """Replicates the PyTorch buffer exactly (the reference requires odd d_model,
    since it uses div_term[:-1] for the cos channels)."""
    position = jnp.arange(max_len, dtype=jnp.float32)[:, None]            # (L, 1)
    div_term = jnp.exp(
        jnp.arange(0, d_model, 2, dtype=jnp.float32)
        * (-math.log(10000.0) / d_model)
    )                                                                     # ((D+1)//2,)
    pe = jnp.zeros((max_len, d_model), dtype=jnp.float32)
    pe = pe.at[:, 0::2].set(jnp.sin(position * div_term))
    pe = pe.at[:, 1::2].set(jnp.cos(position * div_term[:-1]))
    return pe                                                             # (L, D)


# ---------------------------------------------------------------------------
# Kernels (single grid step: whole tensor resident in VMEM)
# ---------------------------------------------------------------------------
def _pe_add_kernel(x_ref, pe_ref, o_ref, *, scale_in):
    # eval-mode forward: (x * scale_in) + pe[:S]   (dropout is identity in eval)
    y = x_ref[...]
    if scale_in != 1.0:                              # static (trace-time) branch
        y = y * jnp.float32(scale_in)
    o_ref[...] = y + pe_ref[...][None, :, :]


def _pe_add_dropout_kernel(x_ref, pe_ref, bits_ref, o_ref, *,
                           scale_in, threshold, inv_keep):
    # training-mode forward: inverted dropout of ((x * scale_in) + pe[:S]).
    # keep iff bits >= threshold  (unsigned compare; keep prob = 1 - p).
    y = x_ref[...]
    if scale_in != 1.0:
        y = y * jnp.float32(scale_in)
    y = y + pe_ref[...][None, :, :]
    keep = bits_ref[...] >= jnp.uint32(threshold)
    o_ref[...] = jnp.where(keep, y * jnp.float32(inv_keep), jnp.float32(0.0))


def _linear_kernel(x_ref, w_ref, b_ref, o_ref):
    # project_to_gpt: x @ W + b  (MXU, f32 accumulate), bias broadcast over rows.
    o_ref[...] = jnp.dot(x_ref[...], w_ref[...],
                         preferred_element_type=jnp.float32) + b_ref[...]


# ---------------------------------------------------------------------------
# Wrappers
# ---------------------------------------------------------------------------
def _pad_last_to_lane(a: jnp.ndarray) -> jnp.ndarray:
    """Pad the last dim up to a multiple of 128 so stores are lane-dense."""
    d = a.shape[-1]
    dp = ((d + LANE - 1) // LANE) * LANE
    if dp == d:
        return a
    pad = [(0, 0)] * (a.ndim - 1) + [(0, dp - d)]
    return jnp.pad(a, pad)


def positional_encoding_eval(x: jnp.ndarray, pe: jnp.ndarray,
                             scale_in: float = 1.0) -> jnp.ndarray:
    """x: (B, S, D) float32;  pe: (max_len, D) float32.  Dropout = identity.
    scale_in=1.0 reproduces PositionalEncoding exactly; scale_in=sqrt(d_model)
    fuses the BehaviourEncoder pre-scaling."""
    B, S, D = x.shape
    xp = _pad_last_to_lane(x)
    pep = _pad_last_to_lane(pe[:S])
    Dp = xp.shape[-1]
    kernel = functools.partial(_pe_add_kernel, scale_in=float(scale_in))
    out = pl.pallas_call(
        kernel,
        out_shape=jax.ShapeDtypeStruct((B, S, Dp), x.dtype),
        grid=(1,),  # single step: whole tensor fits trivially in VMEM
        in_specs=[
            pl.BlockSpec((B, S, Dp), lambda i: (0, 0, 0)),
            pl.BlockSpec((S, Dp), lambda i: (0, 0)),
        ],
        out_specs=pl.BlockSpec((B, S, Dp), lambda i: (0, 0, 0)),
        compiler_params=pltpu.CompilerParams(
            dimension_semantics=("arbitrary",)),
    )(xp, pep)
    return out[..., :D]


def positional_encoding_train(x: jnp.ndarray, pe: jnp.ndarray,
                              key: jax.Array, p: float = 0.1,
                              scale_in: float = 1.0) -> jnp.ndarray:
    """Training-mode forward; dropout mask from host-side uint32 random bits.
    TODO(synk): PyTorch's dropout RNG stream cannot be reproduced bit-exactly;
    we use jax.random bits with an integer keep-threshold instead."""
    B, S, D = x.shape
    xp = _pad_last_to_lane(x)
    pep = _pad_last_to_lane(pe[:S])
    Dp = xp.shape[-1]
    bits = jax.random.bits(key, (B, S, Dp), dtype=jnp.uint32)
    threshold = int(round(p * (2 ** 32)))        # keep prob = 1 - p
    inv_keep = 1.0 / (1.0 - p)
    kernel = functools.partial(_pe_add_dropout_kernel,
                               scale_in=float(scale_in),
                               threshold=threshold, inv_keep=inv_keep)
    out = pl.pallas_call(
        kernel,
        out_shape=jax.ShapeDtypeStruct((B, S, Dp), x.dtype),
        grid=(1,),
        in_specs=[
            pl.BlockSpec((B, S, Dp), lambda i: (0, 0, 0)),
            pl.BlockSpec((S, Dp), lambda i: (0, 0)),
            pl.BlockSpec((B, S, Dp), lambda i: (0, 0, 0)),
        ],
        out_specs=pl.BlockSpec((B, S, Dp), lambda i: (0, 0, 0)),
        compiler_params=pltpu.CompilerParams(
            dimension_semantics=("arbitrary",)),
    )(xp, pep, bits)
    return out[..., :D]


def project_to_gpt(x: jnp.ndarray, w: jnp.ndarray, b: jnp.ndarray) -> jnp.ndarray:
    """nn.Linear(d_model -> gpt_embedding_size):  out = x @ w + b.
    x: (B, S, D);  w: (D, E)  (i.e. torch W.T);  b: (E,)."""
    B, S, D = x.shape
    E = w.shape[1]
    xp = _pad_last_to_lane(x).reshape(B * S, -1)      # (B*S, Dp), zero-padded K
    Dp = xp.shape[-1]
    wp = jnp.pad(w, ((0, Dp - D), (0, 0)))            # zero-pad K to match
    b2 = b.reshape(1, E)
    out = pl.pallas_call(
        _linear_kernel,
        out_shape=jax.ShapeDtypeStruct((B * S, E), jnp.float32),
        grid=(1,),
        in_specs=[
            pl.BlockSpec((B * S, Dp), lambda i: (0, 0)),
            pl.BlockSpec((Dp, E), lambda i: (0, 0)),
            pl.BlockSpec((1, E), lambda i: (0, 0)),
        ],
        out_specs=pl.BlockSpec((B * S, E), lambda i: (0, 0)),
        compiler_params=pltpu.CompilerParams(
            dimension_semantics=("arbitrary",)),
    )(xp, wp, b2)
    return out.reshape(B, S, E)


# ---------------------------------------------------------------------------
# Main
# ---------------------------------------------------------------------------
if __name__ == "__main__":
    # Small shapes consistent with the module's forward: (batch, seq, d_model).
    # d_model must be odd to match the reference module's init math.
    B, S, D = 2, 8, 33
    E = 128          # stand-in gpt_embedding_size (small, lane-dense)
    MAX_LEN = 64
    DROPOUT_P = 0.1

    key = jax.random.PRNGKey(0)
    key_x, key_drop, key_w, key_b = jax.random.split(key, 4)
    x = jax.random.normal(key_x, (B, S, D), dtype=jnp.float32)

    pe = build_pe(D, MAX_LEN)
    ref = x + pe[None, :S, :]

    # --- PositionalEncoding, eval-mode (dropout == identity): exact check ----
    out_eval = jax.block_until_ready(positional_encoding_eval(x, pe))
    assert out_eval.shape == (B, S, D)
    assert jnp.allclose(out_eval, ref, atol=1e-6, rtol=1e-6), "eval mismatch"

    # --- PositionalEncoding, training-mode: exact check (mask reproducible) --
    out_train = jax.block_until_ready(
        positional_encoding_train(x, pe, key_drop, p=DROPOUT_P))
    Dp = ((D + LANE - 1) // LANE) * LANE
    bits = jax.random.bits(key_drop, (B, S, Dp), dtype=jnp.uint32)[..., :D]
    keep = bits >= jnp.uint32(int(round(DROPOUT_P * (2 ** 32))))
    expected = jnp.where(keep, ref * (1.0 / (1.0 - DROPOUT_P)), 0.0)
    assert out_train.shape == (B, S, D)
    assert jnp.allclose(out_train, expected, atol=1e-5, rtol=1e-5), \
        "train-mode dropout mismatch"

    # --- BehaviourEncoder prelude (fused scale + PE, eval) --------------------
    sqrt_d = math.sqrt(D)
    enc = jax.block_until_ready(positional_encoding_eval(x, pe, scale_in=sqrt_d))
    ref_enc = x * sqrt_d + pe[None, :S, :]
    assert jnp.allclose(enc, ref_enc, atol=1e-5, rtol=1e-5), "scaled PE mismatch"

    # --- project_to_gpt linear (MXU kernel) -----------------------------------
    # TODO(synk): the nn.TransformerEncoder between the PE and this projection is
    # not reimplemented; we project the encoded features directly for the check.
    w = 0.02 * jax.random.normal(key_w, (D, E), dtype=jnp.float32)   # = torch W.T
    b = 0.02 * jax.random.normal(key_b, (E,), dtype=jnp.float32)
    proj = jax.block_until_ready(project_to_gpt(enc, w, b))
    ref_proj = jnp.einsum("bsd,de->bse", ref_enc, w) + b
    assert proj.shape == (B, S, E)
    # Tolerance accounts for MXU vs XLA default matmul precision modes.
    assert jnp.allclose(proj, ref_proj, atol=2e-2, rtol=2e-2), "linear mismatch"

    print("KERNEL_OK")
</pallas_src>

<mosaic_0001>
module attributes {stable_mosaic.version = 11 : i64} {
  func.func @_pe_add_kernel(%arg0: i32, %arg1: memref<2x8x128xf32, #tpu.memory_space<vmem>>, %arg2: memref<8x128xf32, #tpu.memory_space<vmem>>, %arg3: memref<2x8x128xf32, #tpu.memory_space<vmem>>) attributes {dimension_semantics = [#tpu.dimension_semantics<arbitrary>], iteration_bounds = array<i64: 1>, scalar_prefetch = 0 : i64, scratch_operands = 0 : i64, tpu.core_type = #tpu.core_type<tc>, window_params = [{pipeline_mode = #tpu.pipeline_mode<synchronous>, transform_indices = @transform_0, window_bounds = array<i64: 2, 8, 128>}, {pipeline_mode = #tpu.pipeline_mode<synchronous>, transform_indices = @transform_1, window_bounds = array<i64: 8, 128>}, {pipeline_mode = #tpu.pipeline_mode<synchronous>, transform_indices = @transform_2, window_bounds = array<i64: 2, 8, 128>}]} {
    %c0 = arith.constant 0 : index
    %c0_0 = arith.constant 0 : index
    %c0_1 = arith.constant 0 : index
    %0 = vector.load %arg1[%c0, %c0_0, %c0_1] : memref<2x8x128xf32, #tpu.memory_space<vmem>>, vector<2x8x128xf32>
    %c0_2 = arith.constant 0 : index
    %c0_3 = arith.constant 0 : index
    %1 = vector.load %arg2[%c0_2, %c0_3] : memref<8x128xf32, #tpu.memory_space<vmem>>, vector<8x128xf32>
    %2 = vector.shape_cast %1 : vector<8x128xf32> to vector<1x8x128xf32>
    %3 = vector.broadcast %2 : vector<1x8x128xf32> to vector<2x8x128xf32>
    %4 = arith.addf %0, %3 : vector<2x8x128xf32>
    %c0_4 = arith.constant 0 : index
    %c0_5 = arith.constant 0 : index
    %c0_6 = arith.constant 0 : index
    %5 = vector.load %arg3[%c0_4, %c0_5, %c0_6] : memref<2x8x128xf32, #tpu.memory_space<vmem>>, vector<2x8x128xf32>
    tpu.vector_store %arg3[%c0_4, %c0_5, %c0_6], %4 {strides = array<i32>} : memref<2x8x128xf32, #tpu.memory_space<vmem>>, vector<2x8x128xf32>,
    return
  }
  func.func @transform_0(%arg0: i32) -> (i32, i32, i32) {
    %c0_i32 = arith.constant 0 : i32
    %c0_i32_0 = arith.constant 0 : i32
    %c0_i32_1 = arith.constant 0 : i32
    %c0_i32_2 = arith.constant 0 : i32
    return %c0_i32, %c0_i32_0, %c0_i32_1 : i32, i32, i32
  }
  func.func @transform_1(%arg0: i32) -> (i32, i32) {
    %c0_i32 = arith.constant 0 : i32
    %c0_i32_0 = arith.constant 0 : i32
    %c0_i32_1 = arith.constant 0 : i32
    return %c0_i32, %c0_i32_0 : i32, i32
  }
  func.func @transform_2(%arg0: i32) -> (i32, i32, i32) {
    %c0_i32 = arith.constant 0 : i32
    %c0_i32_0 = arith.constant 0 : i32
    %c0_i32_1 = arith.constant 0 : i32
    %c0_i32_2 = arith.constant 0 : i32
    return %c0_i32, %c0_i32_0, %c0_i32_1 : i32, i32, i32
  }
}

</mosaic_0001>

<bundles_post_ra>
// kernel: tpu_custom_call.1
= control target key start
LH: loop header
LB: loop body
LE: loop exit
PB: predicated region body
PF: predicated region fallthrough
CT: control target
= control target key end

     0   :  { %7 = vsyncpa [#allocation3], 0  ;;  %s202_s0 = inlined_call_operand.hbm [shape: f32[2,8,128], index: 0, kind: input, shape index: {}]   ;;  %s203_s1 = inlined_call_operand.hbm [shape: f32[8,128], index: 1, kind: input, shape index: {}]   ;;  %s204_s2 = inlined_call_operand.hbm [shape: f32[2,8,128], index: 2, kind: output, shape index: {}]  }
   0x1   :  { %8 = vsyncpa [#allocation6], 0 }
   0x2   :  { %9 = vsyncpa [#allocation4], 0  ;;  %s140_s9 = smov [#allocation2]   ;;  %s68_s13 = scalar_lea.hbm %s202_s0, 256 }
   0x3   :  { %s15_s10 = sshll.u32 %s140_s9, 4  ;;  %p69_p0 = scmp.ne.s32.totalorder %s202_s0, %s68_s13  ;;  %s16_s10 = int_to_ptr.vmem [resolvable:$true] %s15_s10 }
   0x4   :  { %p72_p1 = scmp.lt.u32.totalorder %s68_s13, %s202_s0 }
   0x6   :  { %p74_p2 = pnand %p72_p1, %p69_p0 }
   0x8   :  { %77 = shalt.err (!%p74_p2)
}
   0x9   :  { %s78_s18 = scalar_lea.vmem %s16_s10, 256  ;;  %p83_p4 = scmp.lt.s32.totalorder %s16_s10, %s16_s10 }
   0xa   :  { %p79_p3 = scmp.ne.s32.totalorder %s16_s10, %s78_s18  ;;  %p84_p5 = scmp.lt.s32.totalorder %s78_s18, %s78_s18 }
   0xc   :  { %p85_p6 = por %p84_p5, %p83_p4 }
   0xe   :  { %p86_p7 = pnand %p85_p6, %p79_p3 }
  0x10   :  { %89 = shalt.err (!%p86_p7)
}
  0x11   :  { %s141_s19 = smov 128   ;;  %s142_s20 = smov 8  }
  0x12   :  { %21 = dma.hbm_to_vmem [thread:$0]  %s202_s0, 256, %s16_s10, [#allocation3], %s141_s19, %s141_s19, %s142_s20  }
  0x13   :  { %s143_s23 = smov [#allocation5]   ;;  %s90_s27 = scalar_lea.hbm %s203_s1, 128 }
  0x14   :  { %s28_s24 = sshll.u32 %s143_s23, 4  ;;  %p91_p8 = scmp.ne.s32.totalorder %s203_s1, %s90_s27  ;;  %s29_s24 = int_to_ptr.vmem [resolvable:$true] %s28_s24 }
  0x15   :  { %p94_p9 = scmp.lt.u32.totalorder %s90_s27, %s203_s1 }
  0x17   :  { %p96_p10 = pnand %p94_p9, %p91_p8 }
  0x19   :  { %99 = shalt.err (!%p96_p10)
}
  0x1a   :  { %s100_s4 = scalar_lea.vmem %s29_s24, 128  ;;  %p105_p12 = scmp.lt.s32.totalorder %s29_s24, %s29_s24 }
  0x1b   :  { %p101_p11 = scmp.ne.s32.totalorder %s29_s24, %s100_s4  ;;  %p106_p13 = scmp.lt.s32.totalorder %s100_s4, %s100_s4 }
  0x1d   :  { %p107_p0 = por %p106_p13, %p105_p12 }
  0x1f   :  { %p108_p1 = pnand %p107_p0, %p101_p11 }
  0x21   :  { %111 = shalt.err (!%p108_p1)
}
  0x22   :  { %31 = dma.hbm_to_vmem [thread:$0]  %s203_s1, 128, %s29_s24, [#allocation6]  }
  0x23   :  { %134 = dma.done.wait [#allocation3], 256  }
  0x24   :  { %135 = vsyncadd [#allocation3], 4294967040 }
  0x25   :  { %136 = dma.done.wait [#allocation6], 128  }
  0x26   :  { %137 = vsyncadd [#allocation6], 4294967168  ;;  %s144_s6 = smov [#allocation7]   ;;  %v38_v0 = vld [vmem:[#allocation2] sm:$0xff]  ;;  %v40_v1 = vld [vmem:[#allocation5] sm:$0xff] }
  0x27   :  { %s50_s7 = sshll.u32 %s144_s6, 4  ;;  %v39_v2 = vld [vmem:[#allocation2 + $0x8] sm:$0xff]  ;;  %v41_v3 = vadd.f32 %v40_v1, %v38_v0  ;;  %s51_s7 = int_to_ptr.vmem [resolvable:$true] %s50_s7 }
  0x28   :  { %v42_v4 = vadd.f32 %v40_v1, %v39_v2  ;;  %s112_s8 = scalar_lea.vmem %s51_s7, 256  ;;  %p117_p3 = scmp.lt.s32.totalorder %s51_s7, %s51_s7 }
  0x29   :  { %43 = vst [vmem:[#allocation7] sm:$0xff] %v41_v3  ;;  %p113_p2 = scmp.ne.s32.totalorder %s51_s7, %s112_s8  ;;  %p118_p4 = scmp.lt.s32.totalorder %s112_s8, %s112_s8 }
  0x2a   :  { %44 = vst [vmem:[#allocation7 + $0x8] sm:$0xff] %v42_v4 }
  0x2b   :  { %p119_p5 = por %p118_p4, %p117_p3 }
  0x2d   :  { %p120_p6 = pnand %p119_p5, %p113_p2 }
  0x2f   :  { %123 = shalt.err (!%p120_p6)
}
  0x30   :  { %s124_s10 = scalar_lea.hbm %s204_s2, 256 }
  0x31   :  { %p125_p7 = scmp.ne.s32.totalorder %s204_s2, %s124_s10  ;;  %p128_p8 = scmp.lt.u32.totalorder %s124_s10, %s204_s2 }
  0x33   :  { %p130_p9 = pnand %p128_p8, %p125_p7 }
  0x35   :  { %133 = shalt.err (!%p130_p9)
}
  0x36   :  { %56 = dma.vmem_to_hbm [thread:$0]  %s51_s7, 256, %s204_s2, [#allocation4], %s141_s19, %s141_s19, %s142_s20  }
  0x37   :  { %138 = dma.done.wait [#allocation4], 256  }
  0x38   :  { %139 = vsyncadd [#allocation4], 4294967040 }
  0x39   :  { %60 = vsyncpa [#allocation3], 1 }
  0x3a   :  { %61 = vsyncpa [#allocation6], 1 }
  0x3b   :  { %62 = vsyncpa [#allocation4], 1 }

</bundles_post_ra>
